<compile_context>
chip_gen: v7x
topology: tpu7x:2x2x1
jax: 0.10.0
libtpu: 0.0.40
codegen_flags: <defaults>
</compile_context>

<pallas_src>
import functools
import math

import jax
import jax.numpy as jnp
from jax import lax
from jax.experimental import pallas as pl
from jax.experimental.pallas import tpu as pltpu


def make_pe_table(d_model: int, seq_len: int) -> jax.Array:
    """Build the (seq_len, d_model) sin/cos table exactly like the module __init__."""
    position = jnp.arange(seq_len, dtype=jnp.float32)[:, None]                   # (S, 1)
    div_term = jnp.exp(jnp.arange(0, d_model, 2, dtype=jnp.float32)
                       * (-math.log(1000.0) / d_model))                           # (D/2,)
    pe = jnp.zeros((seq_len, d_model), jnp.float32)
    pe = pe.at[:, 0::2].set(jnp.sin(position * div_term))
    pe = pe.at[:, 1::2].set(jnp.cos(position * div_term))
    return pe


def _pe_dropout_kernel(seed_ref, x_ref, pe_ref, o_ref, *,
                       keep_scale: float, drop_threshold: int, training: bool):
    # seed_ref: (1,) SMEM   x_ref: (tm, Dfold)   pe_ref: (1, Dfold)   o_ref: (tm, Dfold)
    y = x_ref[...] + pe_ref[...]                       # VPU add, PE broadcast over sublanes
    if training and drop_threshold > 0:
        tm, dd = y.shape
        # Stateless per-element hash (murmur3 fmix32) of (seed, grid step, element id).
        rows = lax.broadcasted_iota(jnp.int32, (tm, dd), 0).astype(jnp.uint32)
        cols = lax.broadcasted_iota(jnp.int32, (tm, dd), 1).astype(jnp.uint32)
        pid = pl.program_id(0).astype(jnp.uint32)
        seed = seed_ref[0].astype(jnp.uint32)
        h = (seed * jnp.uint32(0x9E3779B9)
             + pid * jnp.uint32(tm * dd)
             + rows * jnp.uint32(dd) + cols)
        h = h ^ (h >> 16)
        h = h * jnp.uint32(0x85EBCA6B)
        h = h ^ (h >> 13)
        h = h * jnp.uint32(0xC2B2AE35)
        h = h ^ (h >> 16)                              # ~uniform in [0, 2^32)
        drop = h < jnp.uint32(drop_threshold)
        y = jnp.where(drop, jnp.asarray(0.0, y.dtype),
                      y * jnp.asarray(keep_scale, y.dtype))
    o_ref[...] = y.astype(o_ref.dtype)


def positional_encoding_forward(x, pe_table, *, dropout_p: float = 0.0,
                                training: bool = False, seed: int = 0):
    """x: (batch, seq, d_model); pe_table: (seq_len, d_model). Returns same shape as x."""
    batch, seq, d_model = x.shape
    seq_len = pe_table.shape[0]
    if seq >= seq_len:
        raise ValueError("reference module indexes pe[:, x.shape[1], :]; "
                         "requires x.shape[1] < seq_len")

    # Literal module indexing: a single PE row at index `seq`, broadcast everywhere.
    pe_row = pe_table[seq].reshape(1, d_model).astype(x.dtype)

    M = batch * seq

    # Lane-dense folding: fold k rows into lanes so the last dim is a multiple of 128
    # (unmasked full-width stores).  Pure layout plumbing; the add is unchanged.
    k = 128 // math.gcd(d_model, 128)
    if k > 1 and M % k != 0:
        k = 1
    Dfold = d_model * k
    Mfold = M // k
    x2d = x.reshape(Mfold, Dfold)
    pe_fold = jnp.tile(pe_row, (1, k)) if k > 1 else pe_row

    # Row-tile sizing: ~4 MiB per x tile; double-buffered in+out (~16 MiB) plus the
    # resident PE row stays well inside a 48 MiB scoped VMEM budget on v5e/v6e/v7x.
    row_bytes = Dfold * x.dtype.itemsize
    cap_rows = max(8, ((4 << 20) // max(row_bytes, 1)) // 8 * 8)
    if Mfold <= cap_rows:
        if Mfold >= 16 and Mfold % 16 == 0:
            tm = Mfold // 2            # >=2 grid steps so both v7x TCs get work
        else:
            tm = Mfold                 # block dim == full array dim (always legal)
    else:
        tm = cap_rows
    grid = pl.cdiv(Mfold, tm)          # ragged last block handled by Pallas masking

    if training and dropout_p > 0.0:
        if dropout_p >= 1.0:
            raise ValueError("dropout_p must be < 1.0")
        keep_scale = 1.0 / (1.0 - dropout_p)
        drop_threshold = min(int(dropout_p * 4294967296.0), 4294967295)
    else:
        keep_scale = 1.0
        drop_threshold = 0

    kernel = functools.partial(_pe_dropout_kernel,
                               keep_scale=keep_scale,
                               drop_threshold=drop_threshold,
                               training=bool(training))

    out = pl.pallas_call(
        kernel,
        out_shape=jax.ShapeDtypeStruct((Mfold, Dfold), x.dtype),
        grid_spec=pltpu.PrefetchScalarGridSpec(
            num_scalar_prefetch=0,
            grid=(grid,),
            in_specs=[
                pl.BlockSpec(memory_space=pltpu.MemorySpace.SMEM),   # seed scalar
                pl.BlockSpec((tm, Dfold), lambda i: (i, 0)),         # x row tile
                pl.BlockSpec((1, Dfold), lambda i: (0, 0)),          # PE row (VMEM-resident)
            ],
            out_specs=pl.BlockSpec((tm, Dfold), lambda i: (i, 0)),
        ),
        compiler_params=pltpu.CompilerParams(
            dimension_semantics=("parallel",),
            vmem_limit_bytes=48 << 20,
        ),
    )(jnp.asarray([seed], jnp.int32), x2d, pe_fold)

    return out.reshape(batch, seq, d_model)


if __name__ == "__main__":
    # Small shapes consistent with the module; seq < seq_len is required by the
    # reference forward's literal pe[:, x.shape[1], :] indexing.
    batch, seq, d_model, seq_len, p = 2, 8, 32, 16, 0.1

    key = jax.random.PRNGKey(0)
    x = jax.random.normal(key, (batch, seq, d_model), jnp.float32)
    pe_table = make_pe_table(d_model, seq_len)            # module buffer (seq_len, d_model)

    # Pure-JAX reference of the literal module forward (dropout in eval = identity).
    ref = x + pe_table[seq][None, None, :]

    # 1) Eval mode: exact match against the reference.
    y_eval = positional_encoding_forward(x, pe_table, dropout_p=p, training=False)
    y_eval = jax.block_until_ready(y_eval)
    assert y_eval.shape == (batch, seq, d_model)
    assert jnp.allclose(y_eval, ref, atol=1e-6, rtol=1e-6)

    # 2) Training mode: every element must be either dropped (exactly 0) or the
    #    reference value scaled by 1/(1-p).
    #    TODO(synk): dropout RNG stream is not bit-matched to torch.nn.Dropout.
    y_train = positional_encoding_forward(x, pe_table, dropout_p=p, training=True, seed=42)
    y_train = jax.block_until_ready(y_train)
    scaled = ref / (1.0 - p)
    ok = (jnp.abs(y_train) < 1e-6) | (jnp.abs(y_train - scaled) < 1e-4)
    assert bool(jnp.all(ok))

    print("KERNEL_OK")
</pallas_src>

<mosaic_0001>
module attributes {stable_mosaic.version = 11 : i64} {
  func.func @_pe_dropout_kernel(%arg0: i32, %arg1: memref<1xi32, #tpu.memory_space<smem>>, %arg2: memref<4x128xf32, #tpu.memory_space<vmem>>, %arg3: memref<1x128xf32, #tpu.memory_space<vmem>>, %arg4: memref<4x128xf32, #tpu.memory_space<vmem>>) attributes {dimension_semantics = [#tpu.dimension_semantics<parallel>], iteration_bounds = array<i64: 1>, scalar_prefetch = 0 : i64, scratch_operands = 0 : i64, tpu.core_type = #tpu.core_type<tc>, window_params = [{transform_indices = @transform_0, window_bounds = array<i64: 1>}, {transform_indices = @transform_1, window_bounds = array<i64: 4, 128>}, {pipeline_mode = #tpu.pipeline_mode<synchronous>, transform_indices = @transform_2, window_bounds = array<i64: 1, 128>}, {transform_indices = @transform_3, window_bounds = array<i64: 4, 128>}]} {
    %c0 = arith.constant 0 : index
    %c0_0 = arith.constant 0 : index
    %0 = vector.load %arg2[%c0, %c0_0] : memref<4x128xf32, #tpu.memory_space<vmem>>, vector<4x128xf32>
    %c0_1 = arith.constant 0 : index
    %c0_2 = arith.constant 0 : index
    %1 = vector.load %arg3[%c0_1, %c0_2] : memref<1x128xf32, #tpu.memory_space<vmem>>, vector<1x128xf32>
    %2 = vector.broadcast %1 : vector<1x128xf32> to vector<4x128xf32>
    %3 = arith.addf %0, %2 : vector<4x128xf32>
    %c0_3 = arith.constant 0 : index
    %c0_4 = arith.constant 0 : index
    %4 = vector.load %arg4[%c0_3, %c0_4] : memref<4x128xf32, #tpu.memory_space<vmem>>, vector<4x128xf32>
    tpu.vector_store %arg4[%c0_3, %c0_4], %3 {strides = array<i32>} : memref<4x128xf32, #tpu.memory_space<vmem>>, vector<4x128xf32>,
    return
  }
  func.func @transform_0(%arg0: i32) -> i32 {
    %c0_i32 = arith.constant 0 : i32
    %c0_i32_0 = arith.constant 0 : i32
    return %c0_i32 : i32
  }
  func.func @transform_1(%arg0: i32) -> (i32, i32) {
    %c0_i32 = arith.constant 0 : i32
    %c0_i32_0 = arith.constant 0 : i32
    return %arg0, %c0_i32 : i32, i32
  }
  func.func @transform_2(%arg0: i32) -> (i32, i32) {
    %c0_i32 = arith.constant 0 : i32
    %c0_i32_0 = arith.constant 0 : i32
    %c0_i32_1 = arith.constant 0 : i32
    return %c0_i32, %c0_i32_0 : i32, i32
  }
  func.func @transform_3(%arg0: i32) -> (i32, i32) {
    %c0_i32 = arith.constant 0 : i32
    %c0_i32_0 = arith.constant 0 : i32
    return %arg0, %c0_i32 : i32, i32
  }
}

</mosaic_0001>

<bundles_post_ra>
// kernel: tpu_custom_call.1
= control target key start
LH: loop header
LB: loop body
LE: loop exit
PB: predicated region body
PF: predicated region fallthrough
CT: control target
= control target key end

     0   :  { %9 = vsyncpa [#allocation4], 0  ;;  %s153_s0 = inlined_call_operand.<no memory space> [shape: s32[1], index: 0, kind: input, shape index: {}]   ;;  %s154_s1 = inlined_call_operand.hbm [shape: f32[4,128], index: 1, kind: input, shape index: {}]   ;;  %s155_s2 = inlined_call_operand.vmem [shape: f32[1,128], index: 2, kind: input, shape index: {}]   ;;  %s156_s3 = inlined_call_operand.hbm [shape: f32[4,128], index: 3, kind: output, shape index: {}]  }
   0x1   :  { %10 = vsyncpa [#allocation5], 0  ;;  %s104_s12 = smov [#allocation3]   ;;  %s56_s16 = scalar_lea.hbm %s154_s1, 64 }
   0x2   :  { %s19_s13 = sshll.u32 %s104_s12, 4  ;;  %p57_p0 = scmp.ne.s32.totalorder %s154_s1, %s56_s16  ;;  %s20_s13 = int_to_ptr.vmem [resolvable:$true] %s19_s13 }
   0x3   :  { %p60_p1 = scmp.lt.u32.totalorder %s56_s16, %s154_s1 }
   0x5   :  { %p62_p2 = pnand %p60_p1, %p57_p0 }
   0x7   :  { %65 = shalt.err (!%p62_p2)
}
   0x8   :  { %s66_s20 = scalar_lea.vmem %s20_s13, 64  ;;  %p71_p4 = scmp.lt.s32.totalorder %s20_s13, %s20_s13 }
   0x9   :  { %p67_p3 = scmp.ne.s32.totalorder %s20_s13, %s66_s20  ;;  %p72_p5 = scmp.lt.s32.totalorder %s66_s20, %s66_s20 }
   0xb   :  { %p73_p6 = por %p72_p5, %p71_p4 }
   0xd   :  { %p74_p7 = pnand %p73_p6, %p67_p3 }
   0xf   :  { %77 = shalt.err (!%p74_p7)
}
  0x10   :  { %22 = dma.hbm_to_vmem [thread:$0]  %s154_s1, 64, %s20_s13, [#allocation4]  }
  0x11   :  { %100 = dma.done.wait [#allocation4], 64  }
  0x12   :  { %101 = vsyncadd [#allocation4], 4294967232  ;;  %s105_s23 = smov [#allocation6]   ;;  %v28_v0 = vld [vmem:[#allocation3] sm:$0xf] }
  0x13   :  { %s44_s24 = sshll.u32 %s105_s23, 4  ;;  %v53_v1 = vld [vmem:[%s155_s2] ss:$0 sm:$0xff]  ;;  %s45_s24 = int_to_ptr.vmem [resolvable:$true] %s44_s24 }
  0x14   :  { %v36_v2 = vadd.f32 %v53_v1, %v28_v0  ;;  %s78_s27 = scalar_lea.vmem %s45_s24, 64  ;;  %p83_p9 = scmp.lt.s32.totalorder %s45_s24, %s45_s24 }
  0x15   :  { %p79_p8 = scmp.ne.s32.totalorder %s45_s24, %s78_s27  ;;  %p84_p10 = scmp.lt.s32.totalorder %s78_s27, %s78_s27 }
  0x16   :  { %37 = vst [vmem:[#allocation6] sm:$0xf] %v36_v2 }
  0x17   :  { %p85_p11 = por %p84_p10, %p83_p9 }
  0x19   :  { %p86_p12 = pnand %p85_p11, %p79_p8 }
  0x1b   :  { %89 = shalt.err (!%p86_p12)
}
  0x1c   :  { %s90_s29 = scalar_lea.hbm %s156_s3, 64 }
  0x1d   :  { %p91_p13 = scmp.ne.s32.totalorder %s156_s3, %s90_s29  ;;  %p94_p0 = scmp.lt.u32.totalorder %s90_s29, %s156_s3 }
  0x1f   :  { %p96_p1 = pnand %p94_p0, %p91_p13 }
  0x21   :  { %99 = shalt.err (!%p96_p1)
}
  0x22   :  { %47 = dma.vmem_to_hbm [thread:$0]  %s45_s24, 64, %s156_s3, [#allocation5]  }
  0x23   :  { %102 = dma.done.wait [#allocation5], 64  }
  0x24   :  { %103 = vsyncadd [#allocation5], 4294967232 }
  0x25   :  { %51 = vsyncpa [#allocation4], 1 }
  0x26   :  { %52 = vsyncpa [#allocation5], 1 }

</bundles_post_ra>
